<compile_context>
chip_gen: v7x
topology: tpu7x:2x2x1
jax: 0.10.0
libtpu: 0.0.40
codegen_flags: <defaults>
</compile_context>

<pallas_src>
import jax
import jax.numpy as jnp
from jax.experimental import pallas as pl
from jax.experimental.pallas import tpu as pltpu

LOWER = 5e-06

# 1024 rows * 128 lanes * 4 B = 512 KiB per logical column; fused (2, 1024, 128)
# block = 1 MiB in + 1 MiB out, double-buffered = 4 MiB total -> fits every gen.
_TILE_R_MAX = 1024


def _toy_kernel(x_ref, f_ref):
    # x_ref: (2, TILE_R, 128);  x_ref[0] = x1 rows, x_ref[1] = x2 rows.
    x1 = x_ref[0]
    x2 = x_ref[1]

    # Single tanh; c1/c2 and tanh(-x2) are all derived from it.
    t = jnp.tanh(0.5 * x2)
    c1 = jnp.maximum(t, 0.0)          # clamp(tanh( 0.5*x2), min=0)
    c2 = jnp.maximum(-t, 0.0)         # clamp(tanh(-0.5*x2), min=0)  (tanh odd)
    tanh_neg_x2 = (-2.0 * t) / (1.0 + t * t)   # = tanh(-x2), half-angle identity

    # f1 = log(clamp(|0.5*(-x1-7) - tanh(-x2)|, LOWER)) + 6
    f1 = jnp.log(jnp.maximum(jnp.abs(0.5 * (-x1 - 7.0) - tanh_neg_x2), LOWER)) + 6.0
    # f2 = log(clamp(|0.5*(-x1+3) + tanh(-x2) + 2|, LOWER)) + 6
    f2 = jnp.log(jnp.maximum(jnp.abs(0.5 * (-x1 + 3.0) + tanh_neg_x2 + 2.0), LOWER)) + 6.0

    # quadratic branches (shared 0.1*(-x2-8)^2 term computed once)
    sq_x2 = 0.1 * jnp.square(-x2 - 8.0)
    f1_sq = (jnp.square(-x1 + 7.0) + sq_x2) / 10.0 - 20.0
    f2_sq = (jnp.square(-x1 - 7.0) + sq_x2) / 10.0 - 20.0

    f_ref[0] = f1 * c1 + f1_sq * c2
    f_ref[1] = f2 * c1 + f2_sq * c2


def _toy_pallas(x_tiles, tile_r):
    """x_tiles: (2, Rpad, 128) f32, Rpad % tile_r == 0  ->  f_tiles same shape."""
    _, rpad, _ = x_tiles.shape
    spec = pl.BlockSpec((2, tile_r, 128), lambda i: (0, i, 0))
    return pl.pallas_call(
        _toy_kernel,
        out_shape=jax.ShapeDtypeStruct((2, rpad, 128), jnp.float32),
        grid_spec=pltpu.PrefetchScalarGridSpec(
            num_scalar_prefetch=0,
            grid=(rpad // tile_r,),
            in_specs=[spec],
            out_specs=spec,
        ),
        compiler_params=pltpu.CompilerParams(
            dimension_semantics=("parallel",),
        ),
    )(x_tiles)


def toy_batch_forward(x):
    """Equivalent of Toy.batch_forward: x (N, 2) -> f (N, 2)."""
    x = jnp.asarray(x, jnp.float32)
    n = x.shape[0]
    rows = -(-n // 128)                              # ceil(N / 128)
    tile_r = min(_TILE_R_MAX, ((rows + 7) // 8) * 8)  # multiple of 8 sublanes
    rpad = ((rows + tile_r - 1) // tile_r) * tile_r
    npad = rpad * 128

    # Single pad + reshape (no scatter-style dynamic-update-slice).
    xt = jnp.pad(x.T, ((0, 0), (0, npad - n)))        # (2, npad)
    x_tiles = xt.reshape(2, rpad, 128)

    f_tiles = _toy_pallas(x_tiles, tile_r)            # (2, rpad, 128)
    f = f_tiles.reshape(2, npad)[:, :n]               # (2, N)
    return f.T                                        # (N, 2)


def toy_forward(x):
    """Equivalent of Toy.forward (compute_grad=False): x (2,) -> f (2,)."""
    # TODO(synk): compute_grad=True branch (autograd Jacobian) not implemented.
    x = jnp.asarray(x, jnp.float32)
    return toy_batch_forward(x[None, :])[0]


def _reference_batch_forward(x):
    """Pure-JAX reference mirroring the torch code, for a sanity check."""
    x = jnp.asarray(x, jnp.float32)
    x1, x2 = x[:, 0], x[:, 1]
    f1 = jnp.log(jnp.maximum(jnp.abs(0.5 * (-x1 - 7) - jnp.tanh(-x2)), LOWER)) + 6
    f2 = jnp.log(jnp.maximum(jnp.abs(0.5 * (-x1 + 3) + jnp.tanh(-x2) + 2), LOWER)) + 6
    c1 = jnp.maximum(jnp.tanh(x2 * 0.5), 0.0)
    f1_sq = ((-x1 + 7) ** 2 + 0.1 * (-x2 - 8) ** 2) / 10 - 20
    f2_sq = ((-x1 - 7) ** 2 + 0.1 * (-x2 - 8) ** 2) / 10 - 20
    c2 = jnp.maximum(jnp.tanh(-x2 * 0.5), 0.0)
    return jnp.stack([f1 * c1 + f1_sq * c2, f2 * c1 + f2_sq * c2], axis=-1)


if __name__ == "__main__":
    key = jax.random.PRNGKey(0)
    k1, k2 = jax.random.split(key)

    # single-point forward (matches Toy.forward signature: x shape (2,))
    x_single = jax.random.uniform(k1, (2,), jnp.float32, minval=-8.0, maxval=8.0)
    f_single = jax.block_until_ready(toy_forward(x_single))

    # small batch (matches Toy.batch_forward: x shape (N, 2))
    x_batch = jax.random.uniform(k2, (8, 2), jnp.float32, minval=-8.0, maxval=8.0)
    f_batch = jax.block_until_ready(toy_batch_forward(x_batch))

    # sanity check against pure-JAX reference (half-angle tanh identity is
    # exact mathematically; allow a few ULPs of extra f32 rounding)
    ref_single = _reference_batch_forward(x_single[None, :])[0]
    ref_batch = _reference_batch_forward(x_batch)
    assert f_single.shape == (2,)
    assert f_batch.shape == (8, 2)
    assert jnp.allclose(f_single, ref_single, atol=1e-4, rtol=1e-5)
    assert jnp.allclose(f_batch, ref_batch, atol=1e-4, rtol=1e-5)

    print("KERNEL_OK")
</pallas_src>

<mosaic_0001>
module attributes {stable_mosaic.version = 11 : i64} {
  func.func @_toy_kernel(%arg0: i32, %arg1: memref<2x8x128xf32, #tpu.memory_space<vmem>>, %arg2: memref<2x8x128xf32, #tpu.memory_space<vmem>>) attributes {dimension_semantics = [#tpu.dimension_semantics<parallel>], iteration_bounds = array<i64: 1>, scalar_prefetch = 0 : i64, scratch_operands = 0 : i64, tpu.core_type = #tpu.core_type<tc>, window_params = [{transform_indices = @transform_0, window_bounds = array<i64: 2, 8, 128>}, {transform_indices = @transform_1, window_bounds = array<i64: 2, 8, 128>}]} {
    %c0 = arith.constant 0 : index
    %c0_0 = arith.constant 0 : index
    %c0_1 = arith.constant 0 : index
    %0 = vector.load %arg1[%c0, %c0_0, %c0_1] : memref<2x8x128xf32, #tpu.memory_space<vmem>>, vector<1x8x128xf32>
    %1 = vector.shape_cast %0 : vector<1x8x128xf32> to vector<8x128xf32>
    %c1 = arith.constant 1 : index
    %c0_2 = arith.constant 0 : index
    %c0_3 = arith.constant 0 : index
    %2 = vector.load %arg1[%c1, %c0_2, %c0_3] : memref<2x8x128xf32, #tpu.memory_space<vmem>>, vector<1x8x128xf32>
    %3 = vector.shape_cast %2 : vector<1x8x128xf32> to vector<8x128xf32>
    %cst = arith.constant 5.000000e-01 : f32
    %4 = vector.broadcast %cst : f32 to vector<8x128xf32>
    %5 = arith.mulf %4, %3 : vector<8x128xf32>
    %6 = math.tanh %5 : vector<8x128xf32>
    %cst_4 = arith.constant 0.000000e+00 : f32
    %7 = vector.broadcast %cst_4 : f32 to vector<8x128xf32>
    %8 = arith.maximumf %6, %7 : vector<8x128xf32>
    %cst_5 = arith.constant 0.000000e+00 : f32
    %9 = vector.broadcast %cst_5 : f32 to vector<8x128xf32>
    %10 = arith.subf %9, %6 : vector<8x128xf32>
    %cst_6 = arith.constant 0.000000e+00 : f32
    %11 = vector.broadcast %cst_6 : f32 to vector<8x128xf32>
    %12 = arith.maximumf %10, %11 : vector<8x128xf32>
    %cst_7 = arith.constant -2.000000e+00 : f32
    %13 = vector.broadcast %cst_7 : f32 to vector<8x128xf32>
    %14 = arith.mulf %13, %6 : vector<8x128xf32>
    %15 = arith.mulf %6, %6 : vector<8x128xf32>
    %cst_8 = arith.constant 1.000000e+00 : f32
    %16 = vector.broadcast %cst_8 : f32 to vector<8x128xf32>
    %17 = arith.addf %16, %15 : vector<8x128xf32>
    %18 = arith.divf %14, %17 : vector<8x128xf32>
    %cst_9 = arith.constant 0.000000e+00 : f32
    %19 = vector.broadcast %cst_9 : f32 to vector<8x128xf32>
    %20 = arith.subf %19, %1 : vector<8x128xf32>
    %cst_10 = arith.constant 7.000000e+00 : f32
    %21 = vector.broadcast %cst_10 : f32 to vector<8x128xf32>
    %22 = arith.subf %20, %21 : vector<8x128xf32>
    %cst_11 = arith.constant 5.000000e-01 : f32
    %23 = vector.broadcast %cst_11 : f32 to vector<8x128xf32>
    %24 = arith.mulf %23, %22 : vector<8x128xf32>
    %25 = arith.subf %24, %18 : vector<8x128xf32>
    %26 = math.absf %25 : vector<8x128xf32>
    %cst_12 = arith.constant 5.000000e-06 : f32
    %27 = vector.broadcast %cst_12 : f32 to vector<8x128xf32>
    %28 = arith.maximumf %26, %27 : vector<8x128xf32>
    %29 = math.log %28 : vector<8x128xf32>
    %cst_13 = arith.constant 6.000000e+00 : f32
    %30 = vector.broadcast %cst_13 : f32 to vector<8x128xf32>
    %31 = arith.addf %29, %30 : vector<8x128xf32>
    %cst_14 = arith.constant 0.000000e+00 : f32
    %32 = vector.broadcast %cst_14 : f32 to vector<8x128xf32>
    %33 = arith.subf %32, %1 : vector<8x128xf32>
    %cst_15 = arith.constant 3.000000e+00 : f32
    %34 = vector.broadcast %cst_15 : f32 to vector<8x128xf32>
    %35 = arith.addf %33, %34 : vector<8x128xf32>
    %cst_16 = arith.constant 5.000000e-01 : f32
    %36 = vector.broadcast %cst_16 : f32 to vector<8x128xf32>
    %37 = arith.mulf %36, %35 : vector<8x128xf32>
    %38 = arith.addf %37, %18 : vector<8x128xf32>
    %cst_17 = arith.constant 2.000000e+00 : f32
    %39 = vector.broadcast %cst_17 : f32 to vector<8x128xf32>
    %40 = arith.addf %38, %39 : vector<8x128xf32>
    %41 = math.absf %40 : vector<8x128xf32>
    %cst_18 = arith.constant 5.000000e-06 : f32
    %42 = vector.broadcast %cst_18 : f32 to vector<8x128xf32>
    %43 = arith.maximumf %41, %42 : vector<8x128xf32>
    %44 = math.log %43 : vector<8x128xf32>
    %cst_19 = arith.constant 6.000000e+00 : f32
    %45 = vector.broadcast %cst_19 : f32 to vector<8x128xf32>
    %46 = arith.addf %44, %45 : vector<8x128xf32>
    %cst_20 = arith.constant 0.000000e+00 : f32
    %47 = vector.broadcast %cst_20 : f32 to vector<8x128xf32>
    %48 = arith.subf %47, %3 : vector<8x128xf32>
    %cst_21 = arith.constant 8.000000e+00 : f32
    %49 = vector.broadcast %cst_21 : f32 to vector<8x128xf32>
    %50 = arith.subf %48, %49 : vector<8x128xf32>
    %51 = arith.mulf %50, %50 : vector<8x128xf32>
    %cst_22 = arith.constant 1.000000e-01 : f32
    %52 = vector.broadcast %cst_22 : f32 to vector<8x128xf32>
    %53 = arith.mulf %52, %51 : vector<8x128xf32>
    %cst_23 = arith.constant 0.000000e+00 : f32
    %54 = vector.broadcast %cst_23 : f32 to vector<8x128xf32>
    %55 = arith.subf %54, %1 : vector<8x128xf32>
    %cst_24 = arith.constant 7.000000e+00 : f32
    %56 = vector.broadcast %cst_24 : f32 to vector<8x128xf32>
    %57 = arith.addf %55, %56 : vector<8x128xf32>
    %58 = arith.mulf %57, %57 : vector<8x128xf32>
    %59 = arith.addf %58, %53 : vector<8x128xf32>
    %cst_25 = arith.constant 1.000000e+01 : f32
    %60 = vector.broadcast %cst_25 : f32 to vector<8x128xf32>
    %61 = arith.divf %59, %60 : vector<8x128xf32>
    %cst_26 = arith.constant 2.000000e+01 : f32
    %62 = vector.broadcast %cst_26 : f32 to vector<8x128xf32>
    %63 = arith.subf %61, %62 : vector<8x128xf32>
    %cst_27 = arith.constant 0.000000e+00 : f32
    %64 = vector.broadcast %cst_27 : f32 to vector<8x128xf32>
    %65 = arith.subf %64, %1 : vector<8x128xf32>
    %cst_28 = arith.constant 7.000000e+00 : f32
    %66 = vector.broadcast %cst_28 : f32 to vector<8x128xf32>
    %67 = arith.subf %65, %66 : vector<8x128xf32>
    %68 = arith.mulf %67, %67 : vector<8x128xf32>
    %69 = arith.addf %68, %53 : vector<8x128xf32>
    %cst_29 = arith.constant 1.000000e+01 : f32
    %70 = vector.broadcast %cst_29 : f32 to vector<8x128xf32>
    %71 = arith.divf %69, %70 : vector<8x128xf32>
    %cst_30 = arith.constant 2.000000e+01 : f32
    %72 = vector.broadcast %cst_30 : f32 to vector<8x128xf32>
    %73 = arith.subf %71, %72 : vector<8x128xf32>
    %74 = arith.mulf %31, %8 : vector<8x128xf32>
    %75 = arith.mulf %63, %12 : vector<8x128xf32>
    %76 = arith.addf %74, %75 : vector<8x128xf32>
    %c0_31 = arith.constant 0 : index
    %c0_32 = arith.constant 0 : index
    %c0_33 = arith.constant 0 : index
    %77 = vector.load %arg2[%c0_31, %c0_32, %c0_33] : memref<2x8x128xf32, #tpu.memory_space<vmem>>, vector<1x8x128xf32>
    %78 = vector.shape_cast %77 : vector<1x8x128xf32> to vector<8x128xf32>
    %79 = vector.shape_cast %76 : vector<8x128xf32> to vector<1x8x128xf32>
    tpu.vector_store %arg2[%c0_31, %c0_32, %c0_33], %79 {strides = array<i32>} : memref<2x8x128xf32, #tpu.memory_space<vmem>>, vector<1x8x128xf32>,
    %80 = arith.mulf %46, %8 : vector<8x128xf32>
    %81 = arith.mulf %73, %12 : vector<8x128xf32>
    %82 = arith.addf %80, %81 : vector<8x128xf32>
    %c1_34 = arith.constant 1 : index
    %c0_35 = arith.constant 0 : index
    %c0_36 = arith.constant 0 : index
    %83 = vector.load %arg2[%c1_34, %c0_35, %c0_36] : memref<2x8x128xf32, #tpu.memory_space<vmem>>, vector<1x8x128xf32>
    %84 = vector.shape_cast %83 : vector<1x8x128xf32> to vector<8x128xf32>
    %85 = vector.shape_cast %82 : vector<8x128xf32> to vector<1x8x128xf32>
    tpu.vector_store %arg2[%c1_34, %c0_35, %c0_36], %85 {strides = array<i32>} : memref<2x8x128xf32, #tpu.memory_space<vmem>>, vector<1x8x128xf32>,
    return
  }
  func.func @transform_0(%arg0: i32) -> (i32, i32, i32) {
    %c0_i32 = arith.constant 0 : i32
    %c0_i32_0 = arith.constant 0 : i32
    %c0_i32_1 = arith.constant 0 : i32
    return %c0_i32, %arg0, %c0_i32_0 : i32, i32, i32
  }
  func.func @transform_1(%arg0: i32) -> (i32, i32, i32) {
    %c0_i32 = arith.constant 0 : i32
    %c0_i32_0 = arith.constant 0 : i32
    %c0_i32_1 = arith.constant 0 : i32
    return %c0_i32, %arg0, %c0_i32_0 : i32, i32, i32
  }
}

</mosaic_0001>

<bundles_post_ra>
// kernel: tpu_custom_call.1
= control target key start
LH: loop header
LB: loop body
LE: loop exit
PB: predicated region body
PF: predicated region fallthrough
CT: control target
= control target key end

     0   :  { %6 = vsyncpa [#allocation3], 0  ;;  %s202_s0 = inlined_call_operand.hbm [shape: f32[2,8,128], index: 0, kind: input, shape index: {}]   ;;  %s203_s1 = inlined_call_operand.hbm [shape: f32[2,8,128], index: 1, kind: output, shape index: {}]  }
   0x1   :  { %7 = vsyncpa [#allocation4], 0  ;;  %s158_s6 = smov [#allocation2]   ;;  %s110_s10 = scalar_lea.hbm %s202_s0, 256 }
   0x2   :  { %s13_s7 = sshll.u32 %s158_s6, 4  ;;  %p111_p0 = scmp.ne.s32.totalorder %s202_s0, %s110_s10  ;;  %s14_s7 = int_to_ptr.vmem [resolvable:$true] %s13_s7 }
   0x3   :  { %p114_p1 = scmp.lt.u32.totalorder %s110_s10, %s202_s0 }
   0x5   :  { %p116_p2 = pnand %p114_p1, %p111_p0 }
   0x7   :  { %119 = shalt.err (!%p116_p2)
}
   0x8   :  { %s120_s15 = scalar_lea.vmem %s14_s7, 256  ;;  %p125_p4 = scmp.lt.s32.totalorder %s14_s7, %s14_s7 }
   0x9   :  { %p121_p3 = scmp.ne.s32.totalorder %s14_s7, %s120_s15  ;;  %p126_p5 = scmp.lt.s32.totalorder %s120_s15, %s120_s15 }
   0xb   :  { %p127_p6 = por %p126_p5, %p125_p4 }
   0xd   :  { %p128_p7 = pnand %p127_p6, %p121_p3 }
   0xf   :  { %131 = shalt.err (!%p128_p7)
}
  0x10   :  { %s159_s16 = smov 128   ;;  %s160_s17 = smov 8  }
  0x11   :  { %19 = dma.hbm_to_vmem [thread:$0]  %s202_s0, 256, %s14_s7, [#allocation3], %s159_s16, %s159_s16, %s160_s17  }
  0x12   :  { %154 = dma.done.wait [#allocation3], 256  }
  0x13   :  { %155 = vsyncadd [#allocation3], 4294967040  ;;  %v25_v0 = vld [vmem:[#allocation2 + $0x8] sm:$0xff]  ;;  %v23_v4 = vld [vmem:[#allocation2] sm:$0xff]  ;;  %s161_s0 = smov [#allocation5]  }
  0x14   :  { %v26_v1 = vmul.f32 0.5, %v25_v0  ;;  %v36_v6 = vsub.f32 0.0, %v23_v4  ;;  %v54_v7 = vsub.f32 0.0, %v25_v0  ;;  %s82_s20 = sshll.u32 %s161_s0, 4  ;;  %s83_s20 = int_to_ptr.vmem [resolvable:$true] %s82_s20 }
  0x15   :  { %s132_s21 = scalar_lea.vmem %s83_s20, 256  ;;  %p137_p9 = scmp.lt.s32.totalorder %s83_s20, %s83_s20 }
  0x16   :  { %102 = vtanh.f32 %v26_v1  ;;  %v94_v8 = vadd.f32 -7.0, %v36_v6  ;;  %v45_v9 = vadd.f32 3.0, %v36_v6  ;;  %v95_v11 = vadd.f32 -8.0, %v54_v7  ;;  %p133_p8 = scmp.ne.s32.totalorder %s83_s20, %s132_s21  ;;  %p138_p10 = scmp.lt.s32.totalorder %s132_s21, %s132_s21 }
  0x17   :  { %v58_v17 = vadd.f32 7.0, %v36_v6 }
  0x18   :  { %v38_v12 = vmul.f32 0.5, %v94_v8  ;;  %v46_v13 = vmul.f32 0.5, %v45_v9  ;;  %v56_v16 = vmul.f32 %v95_v11, %v95_v11  ;;  %v64_v26 = vmul.f32 %v94_v8, %v94_v8  ;;  %p139_p11 = por %p138_p10, %p137_p9 }
  0x19   :  { %v59_v23 = vmul.f32 %v58_v17, %v58_v17 }
  0x1a   :  { %v57_v22 = vmul.f32 0.1, %v56_v16  ;;  %p140_p12 = pnand %p139_p11, %p133_p8 }
  0x1c   :  { %v60_v28 = vadd.f32 %v59_v23, %v57_v22  ;;  %v65_v29 = vadd.f32 %v64_v26, %v57_v22 }
  0x1e   :  { %v62_v31 = vmul.f32 0.1, %v60_v28  ;;  %v66_v32 = vmul.f32 0.1, %v65_v29 }
  0x20   :  { %v103_v2 = vpop.eup %102  ;;  %v96_v34 = vadd.f32 -20.0, %v62_v31  ;;  %v97_v38 = vadd.f32 -20.0, %v66_v32 }
  0x21   :  { %v32_v3 = vmul.f32 %v103_v2, %v103_v2  ;;  %v31_v10 = vmul.f32 -2.0, %v103_v2  ;;  %v29_v30 = vsub.f32 0.0, %v103_v2  ;;  %v28_v36 = vmax.f32 %v103_v2, 0.0 }
  0x23   :  { %v33_v5 = vadd.f32 1.0, %v32_v3  ;;  %v30_v33 = vmax.f32 %v29_v30, 0.0 }
  0x25   :  { %104 = vrcp.f32 %v33_v5  ;;  %v69_v41 = vmul.f32 %v96_v34, %v30_v33  ;;  %v73_v45 = vmul.f32 %v97_v38, %v30_v33 }
  0x2f   :  { %v105_v14 = vpop.eup %104 }
  0x30   :  { %v35_v15 = vmul.f32 %v105_v14, %v31_v10 }
  0x32   :  { %v39_v18 = vsub.f32 %v38_v12, %v35_v15  ;;  %v47_v19 = vadd.f32 %v46_v13, %v35_v15 }
  0x34   :  { %v40_v20 = vand.u32 2147483647, %v39_v18  ;;  %v48_v21 = vadd.f32 2.0, %v47_v19 }
  0x36   :  { %v41_v24 = vmax.f32 %v40_v20, 5e-06  ;;  %v49_v25 = vand.u32 2147483647, %v48_v21 }
  0x38   :  { %106 = vlog2.f32 %v41_v24  ;;  %v50_v27 = vmax.f32 %v49_v25, 5e-06 }
  0x3a   :  { %108 = vlog2.f32 %v50_v27 }
  0x42   :  { %v107_v35 = vpop.eup %106 }
  0x43   :  { %v43_v37 = vmul.f32 0.6931472, %v107_v35 }
  0x44   :  { %v109_v39 = vpop.eup %108 }
  0x45   :  { %v44_v40 = vadd.f32 6.0, %v43_v37  ;;  %v52_v42 = vmul.f32 0.6931472, %v109_v39 }
  0x47   :  { %v68_v43 = vmul.f32 %v44_v40, %v28_v36  ;;  %v53_v44 = vadd.f32 6.0, %v52_v42 }
  0x49   :  { %v70_v46 = vadd.f32 %v69_v41, %v68_v43  ;;  %v72_v47 = vmul.f32 %v53_v44, %v28_v36 }
  0x4b   :  { %71 = vst [vmem:[#allocation5] sm:$0xff] %v70_v46  ;;  %v74_v48 = vadd.f32 %v73_v45, %v72_v47 }
  0x4d   :  { %76 = vst [vmem:[#allocation5 + $0x8] sm:$0xff] %v74_v48 }
  0x4e   :  { %143 = shalt.err (!%p140_p12)
}
  0x4f   :  { %s144_s24 = scalar_lea.hbm %s203_s1, 256 }
  0x50   :  { %p145_p13 = scmp.ne.s32.totalorder %s203_s1, %s144_s24  ;;  %p148_p0 = scmp.lt.u32.totalorder %s144_s24, %s203_s1 }
  0x52   :  { %p150_p1 = pnand %p148_p0, %p145_p13 }
  0x54   :  { %153 = shalt.err (!%p150_p1)
}
  0x55   :  { %88 = dma.vmem_to_hbm [thread:$0]  %s83_s20, 256, %s203_s1, [#allocation4], %s159_s16, %s159_s16, %s160_s17  }
  0x56   :  { %156 = dma.done.wait [#allocation4], 256  }
  0x57   :  { %157 = vsyncadd [#allocation4], 4294967040 }
  0x58   :  { %92 = vsyncpa [#allocation3], 1 }
  0x59   :  { %93 = vsyncpa [#allocation4], 1 }

</bundles_post_ra>
